<compile_context>
chip_gen: v7x
topology: tpu7x:2x2x1
jax: 0.10.0
libtpu: 0.0.40
codegen_flags: <defaults>
</compile_context>

<pallas_src>
import jax
import jax.numpy as jnp
import numpy as np
from jax.experimental import pallas as pl
from jax.experimental.pallas import tpu as pltpu

_LANE = 128


def _round_up(x, m):
    return (x + m - 1) // m * m


def rwe_kernel(e1_ref, e2_ref, w1_ref, b1_ref, w2_ref, b2_ref, out_ref, sp_ref):
    e1 = e1_ref[...]
    e2 = e2_ref[...]
    E = e1.shape[1]

    # Build "concat([e1+e2, e1*e2], -1)" in VMEM scratch -> single K=2E matmul
    # against the original (2E, Hp) W1 (better MXU fill than two K=E matmuls).
    sp_ref[:, :E] = e1 + e2
    sp_ref[:, E:] = e1 * e2

    h = jnp.dot(sp_ref[...], w1_ref[...], preferred_element_type=jnp.float32)
    h = jnp.maximum(h + b1_ref[...], 0.0)

    # TODO(synk): dropout is identity (eval mode); training parity would need
    # pltpu.prng_seed + pltpu.stateful_bernoulli with 1/(1-p) scaling.

    out = jnp.dot(h.astype(w2_ref.dtype), w2_ref[...],
                  preferred_element_type=jnp.float32) + b2_ref[...]
    out_ref[...] = out.astype(out_ref.dtype)


def rwe_forward(input1, input2, params, *, tile_m=1024, compute_dtype=jnp.bfloat16):
    """input1/input2: int32 (B, S) token ids. Returns squeeze((B, S, emb_out))."""
    emb_w = params["embedding"]            # (V, E) float32
    w1 = params["w1"]                      # (2E, H)
    b1 = params["b1"]                      # (H,)
    w2 = params["w2"]                      # (H, O)
    b2 = params["b2"]                      # (O,)

    B, S = input1.shape
    _, E = emb_w.shape
    H = w1.shape[1]
    O = w2.shape[1]
    M = B * S

    # Lane-dense padding of the matmul N dims (unmasked MXU / stores).
    Hp = _round_up(H, _LANE)
    Op = _round_up(O, _LANE)

    # Token tile: multiple of 16 (bf16 sublane packing); pad M to a multiple.
    tm = min(tile_m, _round_up(M, 16))
    Mp = _round_up(M, tm)

    # Embedding gather (XLA fuses the bf16 cast into the gather fusion).
    # TODO(synk): for very large M, fuse the gather into the kernel via
    # PrefetchScalarGridSpec-prefetched ids + per-row DMA to remove this extra
    # HBM round trip.
    e1 = jnp.take(emb_w, input1.reshape(-1), axis=0).astype(compute_dtype)
    e2 = jnp.take(emb_w, input2.reshape(-1), axis=0).astype(compute_dtype)
    if Mp != M:
        e1 = jnp.pad(e1, ((0, Mp - M), (0, 0)))
        e2 = jnp.pad(e2, ((0, Mp - M), (0, 0)))

    # Zero-padded bf16 weights; biases stay f32 (added after f32 accumulate).
    w1p = jnp.zeros((2 * E, Hp), compute_dtype).at[:, :H].set(w1.astype(compute_dtype))
    b1p = jnp.zeros((1, Hp), jnp.float32).at[:, :H].set(b1.reshape(1, H))
    w2p = jnp.zeros((Hp, Op), compute_dtype).at[:H, :O].set(w2.astype(compute_dtype))
    b2p = jnp.zeros((1, Op), jnp.float32).at[:, :O].set(b2.reshape(1, O))

    grid = (Mp // tm,)
    tile_spec = lambda shape: pl.BlockSpec(shape, lambda i: (i, 0))   # per-row tile
    resident = lambda shape: pl.BlockSpec(shape, lambda i: (0, 0))    # stays in VMEM

    out = pl.pallas_call(
        rwe_kernel,
        out_shape=jax.ShapeDtypeStruct((Mp, Op), jnp.float32),
        grid=grid,
        in_specs=[
            tile_spec((tm, E)),        # e1 rows
            tile_spec((tm, E)),        # e2 rows
            resident((2 * E, Hp)),     # W1 (resident across grid)
            resident((1, Hp)),         # b1
            resident((Hp, Op)),        # W2
            resident((1, Op)),         # b2
        ],
        out_specs=tile_spec((tm, Op)),
        scratch_shapes=[pltpu.VMEM((tm, 2 * E), compute_dtype)],
        compiler_params=pltpu.CompilerParams(
            dimension_semantics=("parallel",),
            vmem_limit_bytes=32 * 1024 * 1024,
        ),
    )(e1, e2, w1p, b1p, w2p, b2p)

    out = out[:M, :O].reshape(B, S, O)
    # Mirror torch .squeeze() (drops all size-1 dims; here seq=1).
    return jnp.squeeze(out)


def make_params(key, vocab, emb_in, hidden, emb_out):
    k0, k1, k2, k3, k4 = jax.random.split(key, 5)
    embedding = jax.random.normal(k0, (vocab, emb_in), jnp.float32)
    # PyTorch Linear default init: U(-1/sqrt(fan_in), 1/sqrt(fan_in)).
    lim1 = 1.0 / np.sqrt(2 * emb_in)
    w1 = jax.random.uniform(k1, (2 * emb_in, hidden), jnp.float32, -lim1, lim1)
    b1 = jax.random.uniform(k2, (hidden,), jnp.float32, -lim1, lim1)
    lim2 = 1.0 / np.sqrt(hidden)
    w2 = jax.random.uniform(k3, (hidden, emb_out), jnp.float32, -lim2, lim2)
    b2 = jax.random.uniform(k4, (emb_out,), jnp.float32, -lim2, lim2)
    return {"embedding": embedding, "w1": w1, "b1": b1, "w2": w2, "b2": b2}


def reference_forward(input1, input2, params):
    """Pure-JAX f32 reference matching the PyTorch module."""
    emb_w = params["embedding"]
    e1 = jnp.take(emb_w, input1, axis=0)
    e2 = jnp.take(emb_w, input2, axis=0)
    x = jnp.concatenate([e1 + e2, e1 * e2], axis=2)
    h = jnp.squeeze(x @ params["w1"] + params["b1"])
    h = jnp.maximum(h, 0.0)
    return h @ params["w2"] + params["b2"]


if __name__ == "__main__":
    vocab, emb_in, hidden, emb_out = 50, 32, 64, 32
    batch, seq = 8, 1

    key = jax.random.PRNGKey(0)
    kp, ki1, ki2 = jax.random.split(key, 3)
    params = make_params(kp, vocab, emb_in, hidden, emb_out)
    input1 = jax.random.randint(ki1, (batch, seq), 0, vocab, jnp.int32)
    input2 = jax.random.randint(ki2, (batch, seq), 0, vocab, jnp.int32)

    out = jax.jit(rwe_forward)(input1, input2, params)
    out = jax.block_until_ready(out)

    ref = reference_forward(input1, input2, params)
    assert out.shape == (batch, emb_out), out.shape
    # bf16 matmul inputs with f32 accumulate vs f32 reference.
    np.testing.assert_allclose(np.asarray(out), np.asarray(ref), rtol=3e-2, atol=3e-2)

    print("KERNEL_OK")
</pallas_src>

<mosaic_0001>
module attributes {stable_mosaic.version = 11 : i64} {
  func.func @rwe_kernel(%arg0: i32, %arg1: memref<16x32xbf16, #tpu.memory_space<vmem>>, %arg2: memref<16x32xbf16, #tpu.memory_space<vmem>>, %arg3: memref<64x128xbf16, #tpu.memory_space<vmem>>, %arg4: memref<1x128xf32, #tpu.memory_space<vmem>>, %arg5: memref<128x128xbf16, #tpu.memory_space<vmem>>, %arg6: memref<1x128xf32, #tpu.memory_space<vmem>>, %arg7: memref<16x128xf32, #tpu.memory_space<vmem>>, %arg8: memref<16x64xbf16, #tpu.memory_space<vmem>>) attributes {dimension_semantics = [#tpu.dimension_semantics<parallel>], iteration_bounds = array<i64: 1>, scalar_prefetch = 0 : i64, scratch_operands = 1 : i64, tpu.core_type = #tpu.core_type<tc>, window_params = [{transform_indices = @transform_0, window_bounds = array<i64: 16, 32>}, {transform_indices = @transform_1, window_bounds = array<i64: 16, 32>}, {pipeline_mode = #tpu.pipeline_mode<synchronous>, transform_indices = @transform_2, window_bounds = array<i64: 64, 128>}, {pipeline_mode = #tpu.pipeline_mode<synchronous>, transform_indices = @transform_3, window_bounds = array<i64: 1, 128>}, {pipeline_mode = #tpu.pipeline_mode<synchronous>, transform_indices = @transform_4, window_bounds = array<i64: 128, 128>}, {pipeline_mode = #tpu.pipeline_mode<synchronous>, transform_indices = @transform_5, window_bounds = array<i64: 1, 128>}, {transform_indices = @transform_6, window_bounds = array<i64: 16, 128>}]} {
    %c0 = arith.constant 0 : index
    %c0_0 = arith.constant 0 : index
    %0 = vector.load %arg1[%c0, %c0_0] : memref<16x32xbf16, #tpu.memory_space<vmem>>, vector<16x32xbf16>
    %c0_1 = arith.constant 0 : index
    %c0_2 = arith.constant 0 : index
    %1 = vector.load %arg2[%c0_1, %c0_2] : memref<16x32xbf16, #tpu.memory_space<vmem>>, vector<16x32xbf16>
    %2 = arith.addf %0, %1 : vector<16x32xbf16>
    %c0_3 = arith.constant 0 : index
    %c0_4 = arith.constant 0 : index
    %3 = vector.load %arg8[%c0_3, %c0_4] : memref<16x64xbf16, #tpu.memory_space<vmem>>, vector<16x32xbf16>
    tpu.vector_store %arg8[%c0_3, %c0_4], %2 {strides = array<i32>} : memref<16x64xbf16, #tpu.memory_space<vmem>>, vector<16x32xbf16>,
    %4 = arith.mulf %0, %1 : vector<16x32xbf16>
    %c0_5 = arith.constant 0 : index
    %c32 = arith.constant 32 : index
    %5 = vector.load %arg8[%c0_5, %c32] : memref<16x64xbf16, #tpu.memory_space<vmem>>, vector<16x32xbf16>
    tpu.vector_store %arg8[%c0_5, %c32], %4 {strides = array<i32>} : memref<16x64xbf16, #tpu.memory_space<vmem>>, vector<16x32xbf16>,
    %c0_6 = arith.constant 0 : index
    %c0_7 = arith.constant 0 : index
    %6 = vector.load %arg8[%c0_6, %c0_7] : memref<16x64xbf16, #tpu.memory_space<vmem>>, vector<16x64xbf16>
    %c0_8 = arith.constant 0 : index
    %c0_9 = arith.constant 0 : index
    %7 = vector.load %arg3[%c0_8, %c0_9] : memref<64x128xbf16, #tpu.memory_space<vmem>>, vector<64x128xbf16>
    %cst = arith.constant dense<0.000000e+00> : vector<16x128xf32>
    %8 = tpu.matmul %6, %7, %cst {dimension_numbers = #tpu.dot_dimension_numbers<[1], [0], [0], [1], [0, 0, 1, 1], [], []>} : vector<16x64xbf16>, vector<64x128xbf16>, vector<16x128xf32> -> vector<16x128xf32>
    %c0_10 = arith.constant 0 : index
    %c0_11 = arith.constant 0 : index
    %9 = vector.load %arg4[%c0_10, %c0_11] : memref<1x128xf32, #tpu.memory_space<vmem>>, vector<1x128xf32>
    %10 = vector.broadcast %9 : vector<1x128xf32> to vector<16x128xf32>
    %11 = arith.addf %8, %10 : vector<16x128xf32>
    %cst_12 = arith.constant 0.000000e+00 : f32
    %12 = vector.broadcast %cst_12 : f32 to vector<16x128xf32>
    %13 = arith.maximumf %11, %12 : vector<16x128xf32>
    %14 = arith.truncf %13 : vector<16x128xf32> to vector<16x128xbf16>
    %c0_13 = arith.constant 0 : index
    %c0_14 = arith.constant 0 : index
    %15 = vector.load %arg5[%c0_13, %c0_14] : memref<128x128xbf16, #tpu.memory_space<vmem>>, vector<128x128xbf16>
    %cst_15 = arith.constant dense<0.000000e+00> : vector<16x128xf32>
    %16 = tpu.matmul %14, %15, %cst_15 {dimension_numbers = #tpu.dot_dimension_numbers<[1], [0], [0], [1], [0, 0, 1, 1], [], []>} : vector<16x128xbf16>, vector<128x128xbf16>, vector<16x128xf32> -> vector<16x128xf32>
    %c0_16 = arith.constant 0 : index
    %c0_17 = arith.constant 0 : index
    %17 = vector.load %arg6[%c0_16, %c0_17] : memref<1x128xf32, #tpu.memory_space<vmem>>, vector<1x128xf32>
    %18 = vector.broadcast %17 : vector<1x128xf32> to vector<16x128xf32>
    %19 = arith.addf %16, %18 : vector<16x128xf32>
    %c0_18 = arith.constant 0 : index
    %c0_19 = arith.constant 0 : index
    %20 = vector.load %arg7[%c0_18, %c0_19] : memref<16x128xf32, #tpu.memory_space<vmem>>, vector<16x128xf32>
    tpu.vector_store %arg7[%c0_18, %c0_19], %19 {strides = array<i32>} : memref<16x128xf32, #tpu.memory_space<vmem>>, vector<16x128xf32>,
    return
  }
  func.func @transform_0(%arg0: i32) -> (i32, i32) {
    %c0_i32 = arith.constant 0 : i32
    %c0_i32_0 = arith.constant 0 : i32
    return %arg0, %c0_i32 : i32, i32
  }
  func.func @transform_1(%arg0: i32) -> (i32, i32) {
    %c0_i32 = arith.constant 0 : i32
    %c0_i32_0 = arith.constant 0 : i32
    return %arg0, %c0_i32 : i32, i32
  }
  func.func @transform_2(%arg0: i32) -> (i32, i32) {
    %c0_i32 = arith.constant 0 : i32
    %c0_i32_0 = arith.constant 0 : i32
    %c0_i32_1 = arith.constant 0 : i32
    return %c0_i32, %c0_i32_0 : i32, i32
  }
  func.func @transform_3(%arg0: i32) -> (i32, i32) {
    %c0_i32 = arith.constant 0 : i32
    %c0_i32_0 = arith.constant 0 : i32
    %c0_i32_1 = arith.constant 0 : i32
    return %c0_i32, %c0_i32_0 : i32, i32
  }
  func.func @transform_4(%arg0: i32) -> (i32, i32) {
    %c0_i32 = arith.constant 0 : i32
    %c0_i32_0 = arith.constant 0 : i32
    %c0_i32_1 = arith.constant 0 : i32
    return %c0_i32, %c0_i32_0 : i32, i32
  }
  func.func @transform_5(%arg0: i32) -> (i32, i32) {
    %c0_i32 = arith.constant 0 : i32
    %c0_i32_0 = arith.constant 0 : i32
    %c0_i32_1 = arith.constant 0 : i32
    return %c0_i32, %c0_i32_0 : i32, i32
  }
  func.func @transform_6(%arg0: i32) -> (i32, i32) {
    %c0_i32 = arith.constant 0 : i32
    %c0_i32_0 = arith.constant 0 : i32
    return %arg0, %c0_i32 : i32, i32
  }
}

</mosaic_0001>

<bundles_post_ra>
// kernel: rwe_forward.1
= control target key start
LH: loop header
LB: loop body
LE: loop exit
PB: predicated region body
PF: predicated region fallthrough
CT: control target
= control target key end

     0   :  { %v334_v3 = vmov 0.0   ;;  %vm335_vm0 = vmmov 0   ;;  %vm36_vm1 = vcmask 261120   ;;  %vm48_vm2 = vcmask 523520   ;;  %s432_s0 = inlined_call_operand.vmem [shape: bf16[16,32], index: 0, kind: input, shape index: {}]   ;;  %s433_s1 = inlined_call_operand.vmem [shape: bf16[16,32], index: 1, kind: input, shape index: {}]   ;;  %s434_s2 = inlined_call_operand.vmem [shape: bf16[64,128], index: 2, kind: input, shape index: {}]   ;;  %s435_s4 = inlined_call_operand.vmem [shape: bf16[128,128], index: 4, kind: input, shape index: {}]   ;;  %s436_s3 = inlined_call_operand.vmem [shape: f32[1,128], index: 3, kind: input, shape index: {}]   ;;  %s437_s5 = inlined_call_operand.vmem [shape: f32[1,128], index: 5, kind: input, shape index: {}]   ;;  %s438_s6 = inlined_call_operand.vmem [shape: f32[16,128], index: 6, kind: output, shape index: {}]  }
   0x1   :  { %v24_v0 = vld [vmem:[%s432_s0] sm:$0xf]  ;;  %v25_v1 = vld [vmem:[%s432_s0 + $0x4] sm:$0xf]  ;;  %287 = vmatprep.subr.bf16.mxu0 %v334_v3  ;;  %295 = vmatprep.mubr.msk.bf16.mxu0 %vm335_vm0, %v334_v3  ;;  %v323_v11 = vld [vmem:[%s434_s2 + $0x8] sm:$0xff]   ;;  %vm90_vm3 = vcmask 523264  }
   0x2   :  { %v26_v2 = vld [vmem:[%s433_s1] sm:$0xf]  ;;  %v27_v4 = vld [vmem:[%s433_s1 + $0x4] sm:$0xf]  ;;  %299 = vmatprep.subr.bf16.mxu1 %v334_v3  ;;  %315 = vmatprep.mubr.msk.bf16.mxu1 %vm335_vm0, %v334_v3  ;;  %s336_s1 = smov 32   ;;  %v324_v14 = vld [vmem:[%s434_s2 + $0x10] sm:$0xff]  }
   0x3   :  { %v28_v5 = vadd.bf16 %v26_v2, %v24_v0  ;;  %v38_v6 = vmul.bf16 %v26_v2, %v24_v0  ;;  %v29_v7 = vadd.bf16 %v27_v4, %v25_v1  ;;  %v39_v8 = vmul.bf16 %v27_v4, %v25_v1  ;;  %v322_v9 = vld [vmem:[%s434_s2] sm:$0xff]   ;;  %v327_v15 = vld [vmem:[%s435_s4 + $0x8] sm:$0xff]   ;;  %v325_v16 = vld [vmem:[%s434_s2 + $0x18] sm:$0xff]  }
   0x4   :  { %288 = vmatpush3.bf16.msra.mxu0 %v322_v9  ;;  %v326_v13 = vld [vmem:[%s435_s4] sm:$0xff]   ;;  %v328_v17 = vld [vmem:[%s435_s4 + $0x10] sm:$0xff]   ;;  %v329_v18 = vld [vmem:[%s435_s4 + $0x18] sm:$0xff]  }
   0x5   :  { %v257_v10 = vcombine.low %v38_v6, %v39_v8  ;;  %v256_v12 = vcombine.low %v28_v5, %v29_v7  ;;  %289 = vmatprep.subr.bf16.mxu0 %v334_v3  ;;  %300 = vmatpush3.bf16.msra.mxu1 %v326_v13  ;;  %v330_v19 = vld [vmem:[%s435_s4 + $0x20] sm:$0xff]   ;;  %v331_v20 = vld [vmem:[%s435_s4 + $0x28] sm:$0xff]   ;;  %v332_v23 = vld [vmem:[%s435_s4 + $0x30] sm:$0xff]  }
   0x6   :  { %301 = vmatprep.subr.bf16.mxu1 %v334_v3  ;;  %v333_v24 = vld [vmem:[%s435_s4 + $0x38] sm:$0xff]   ;;  %v258_v25 = vld [vmem:[%s436_s3] ss:$0 sm:$0xff] }
   0x7   :  { %45 = vrot.lane.b32.xlu0 %v257_v10, %s336_s1  ;;  %37 = vst.msk [vmem:[#allocation2] sm:$0xff] %vm36_vm1, %v256_v12  ;;  %v264_v35 = vld [vmem:[%s437_s5] ss:$0 sm:$0xff] }
   0x8   :  { %290 = vmatpush3.bf16.msra.mxu0 %v323_v11 }
   0x9   :  { %291 = vmatprep.subr.bf16.mxu0 %v334_v3  ;;  %302 = vmatpush3.bf16.msra.mxu1 %v327_v15 }
   0xa   :  { %303 = vmatprep.subr.bf16.mxu1 %v334_v3 }
   0xc   :  { %292 = vmatpush3.bf16.msra.mxu0 %v324_v14 }
   0xd   :  { %293 = vmatprep.subr.bf16.mxu0 %v334_v3  ;;  %304 = vmatpush3.bf16.msra.mxu1 %v328_v17 }
   0xe   :  { %305 = vmatprep.subr.bf16.mxu1 %v334_v3 }
  0x10   :  { %294 = vmatpush3.bf16.msra.mxu0 %v325_v16 }
  0x11   :  { %306 = vmatpush3.bf16.msra.mxu1 %v329_v18 }
  0x12   :  { %307 = vmatprep.subr.bf16.mxu1 %v334_v3 }
  0x15   :  { %308 = vmatpush3.bf16.msra.mxu1 %v330_v19 }
  0x16   :  { %309 = vmatprep.subr.bf16.mxu1 %v334_v3 }
  0x19   :  { %310 = vmatpush3.bf16.msra.mxu1 %v331_v20 }
  0x1a   :  { %311 = vmatprep.subr.bf16.mxu1 %v334_v3 }
  0x1d   :  { %312 = vmatpush3.bf16.msra.mxu1 %v332_v23 }
  0x1e   :  { %313 = vmatprep.subr.bf16.mxu1 %v334_v3 }
  0x21   :  { %314 = vmatpush3.bf16.msra.mxu1 %v333_v24 }
  0x79   :  { %v46_v21 = vpop.permute.xlu0 %45 }
  0x7a   :  { %49 = vst.msk [vmem:[#allocation2] sm:$0xff] %vm48_vm2, %v46_v21 }
  0x81   :  { %v50_v22 = vld [vmem:[#allocation2] sm:$0xff] }
  0x82   :  { %296 = vmatmul.mubr.msk.bf16.vlgmr.msra.gmra.mrb[0].mxu0 %vm90_vm3, %v50_v22 }
 0x155   :  { %v128_v26 = vpop.f32.mrb[0].mxu0 }
 0x156   :  { %v129_v27 = vadd.f32 %v258_v25, %v128_v26  ;;  %v297_v28 = vpop.f32.mrb[1].mxu0 }
 0x157   :  { %v131_v29 = vpop.f32.mrb[2].mxu0 }
 0x158   :  { %v132_v30 = vadd.f32 %v258_v25, %v131_v29  ;;  %v298_v31 = vpop.f32.mrb[3].mxu0  ;;  %v135_v32 = vmax.f32 %v129_v27, 0.0 }
 0x15a   :  { %v136_v33 = vmax.f32 %v132_v30, 0.0 }
 0x15c   :  { %v137_v34 = vpack.c.bf16 %v136_v33, %v135_v32 }
 0x15e   :  { %316 = vmatmul.mubr.bf16.vlgmr.msra.gmra.mrb[0].mxu1 %v137_v34 }
 0x231   :  { %v243_v36 = vpop.f32.mrb[0].mxu1 }
 0x232   :  { %v244_v37 = vadd.f32 %v264_v35, %v243_v36  ;;  %v317_v38 = vpop.f32.mrb[1].mxu1 }
 0x233   :  { %v246_v39 = vpop.f32.mrb[2].mxu1 }
 0x234   :  { %250 = vst [vmem:[%s438_s6] sm:$0xff] %v244_v37  ;;  %v247_v40 = vadd.f32 %v264_v35, %v246_v39  ;;  %v318_v41 = vpop.f32.mrb[3].mxu1 }
 0x236   :  { %251 = vst [vmem:[%s438_s6 + $0x8] sm:$0xff] %v247_v40 }

</bundles_post_ra>
